<compile_context>
chip_gen: v7x
topology: tpu7x:2x2x1
jax: 0.10.0
libtpu: 0.0.40
codegen_flags: <defaults>
</compile_context>

<pallas_src>
import functools
import math

import jax
import jax.numpy as jnp
import numpy as np
from jax import lax
from jax.experimental import pallas as pl
from jax.experimental.pallas import tpu as pltpu


def mhca_kernel(q_ref, k_ref, v_ref, wq_ref, wk_ref, wv_ref,
                wfc_ref, bfc_ref, pos_ref, o_ref, acc_ref, *, inv_scale):
    h = pl.program_id(1)
    n_heads = pl.num_programs(1)

    bblk, n, inp = q_ref.shape
    d = wq_ref.shape[-1]

    @pl.when(h == 0)
    def _init():
        acc_ref[...] = jnp.zeros_like(acc_ref)

    # Per-head parameter tiles (wrapper pre-laid them out head-major).
    wq_h = wq_ref[0]        # (INP, d)
    wk_h = wk_ref[0]        # (INP, d)
    wv_h = wv_ref[0]        # (INP, d)
    wfc_h = wfc_ref[0]      # (d, INP)
    pos_h = pos_ref[0]      # (N, N)

    # Fuse batch into the matmul row dim -> MXU-shaped projections.
    q2 = q_ref[...].reshape(bblk * n, inp)
    k2 = k_ref[...].reshape(bblk * n, inp)
    v2 = v_ref[...].reshape(bblk * n, inp)

    # 1/scale folded into Q (cheaper than dividing the (N, N) energy).
    Qh = (jnp.dot(q2, wq_h, preferred_element_type=jnp.float32)
          * inv_scale).reshape(bblk, n, d)
    Kh = jnp.dot(k2, wk_h,
                 preferred_element_type=jnp.float32).reshape(bblk, n, d)
    Vh = jnp.dot(v2, wv_h,
                 preferred_element_type=jnp.float32).reshape(bblk, n, d)

    # energy[b, i, j] = sum_c Qh[b, i, c] * Kh[b, j, c]   (no K transpose)
    energy = lax.dot_general(
        Qh, Kh, (((2,), (2,)), ((0,), (0,))),
        preferred_element_type=jnp.float32)
    energy = energy + pos_h[None]                          # (Bblk, N, N)

    # Numerically-stable softmax over the last dim.
    m = jnp.max(energy, axis=-1, keepdims=True)
    e = jnp.exp(energy - m)
    denom = jnp.sum(e, axis=-1, keepdims=True)
    attn = e * pl.reciprocal(denom, approx=False)

    # out[b, i, c] = sum_j attn[b, i, j] * Vh[b, j, c]
    head_out = lax.dot_general(
        attn, Vh, (((2,), (1,)), ((0,), (0,))),
        preferred_element_type=jnp.float32)                # (Bblk, N, d)

    # Fold the final fc into the head accumulation:
    #   acc += head_out @ W_fc[h*d:(h+1)*d, :]
    contrib = jnp.dot(head_out.reshape(bblk * n, d), wfc_h,
                      preferred_element_type=jnp.float32).reshape(bblk, n, inp)
    acc_ref[...] += contrib

    @pl.when(h == n_heads - 1)
    def _finalize():
        o_ref[...] = (acc_ref[...] + bfc_ref[...]).astype(o_ref.dtype)


def mhca_ein(query, key, value, wq, wk, wv, wfc, bfc, pos, *, n_heads,
             block_b=1):
    b, n, inp_dim = query.shape
    hid_dim = wq.shape[1]
    assert hid_dim % n_heads == 0, "hid_dim must be divisible by n_heads"
    assert b % block_b == 0, "batch must be divisible by block_b"
    d = hid_dim // n_heads
    inv_scale = 1.0 / math.sqrt(d)

    # Head-major weight layouts so the per-head slice is a leading-axis block
    # with full (layout-friendly) trailing tiles.
    wq_h = wq.reshape(inp_dim, n_heads, d).transpose(1, 0, 2)   # (H, INP, d)
    wk_h = wk.reshape(inp_dim, n_heads, d).transpose(1, 0, 2)   # (H, INP, d)
    wv_h = wv.reshape(inp_dim, n_heads, d).transpose(1, 0, 2)   # (H, INP, d)
    wfc_h = wfc.reshape(n_heads, d, inp_dim)                    # (H, d, INP)

    kernel = functools.partial(mhca_kernel, inv_scale=inv_scale)

    return pl.pallas_call(
        kernel,
        out_shape=jax.ShapeDtypeStruct((b, n, inp_dim), query.dtype),
        grid_spec=pltpu.PrefetchScalarGridSpec(
            num_scalar_prefetch=0,
            grid=(pl.cdiv(b, block_b), n_heads),
            in_specs=[
                pl.BlockSpec((block_b, n, inp_dim), lambda i, h: (i, 0, 0)),  # query
                pl.BlockSpec((block_b, n, inp_dim), lambda i, h: (i, 0, 0)),  # key
                pl.BlockSpec((block_b, n, inp_dim), lambda i, h: (i, 0, 0)),  # value
                pl.BlockSpec((1, inp_dim, d), lambda i, h: (h, 0, 0)),        # w_q per head
                pl.BlockSpec((1, inp_dim, d), lambda i, h: (h, 0, 0)),        # w_k per head
                pl.BlockSpec((1, inp_dim, d), lambda i, h: (h, 0, 0)),        # w_v per head
                pl.BlockSpec((1, d, inp_dim), lambda i, h: (h, 0, 0)),        # fc weight per head
                pl.BlockSpec((1, inp_dim), lambda i, h: (0, 0)),              # fc bias
                pl.BlockSpec((1, n, n), lambda i, h: (h, 0, 0)),              # pos_embed per head
            ],
            out_specs=pl.BlockSpec((block_b, n, inp_dim),
                                   lambda i, h: (i, 0, 0)),
            scratch_shapes=[pltpu.VMEM((block_b, n, inp_dim), jnp.float32)],
        ),
        compiler_params=pltpu.CompilerParams(
            dimension_semantics=("parallel", "arbitrary")),
    )(query, key, value, wq_h, wk_h, wv_h, wfc_h, bfc, pos)


def mhca_ein_ref(query, key, value, wq, wk, wv, wfc, bfc, pos, *, n_heads):
    """Pure-JAX reference matching the PyTorch forward."""
    b, n, inp_dim = query.shape
    hid_dim = wq.shape[1]
    d = hid_dim // n_heads
    scale = math.sqrt(d)

    def split_heads(x):                         # (b, n, h*d) -> (b, h, n, d)
        return x.reshape(b, n, n_heads, d).transpose(0, 2, 1, 3)

    Q = split_heads(query @ wq)
    K = split_heads(key @ wk)
    V = split_heads(value @ wv)
    energy = jnp.einsum('bhid,bhjd->bhij', Q, K) / scale + pos[None]
    attn = jax.nn.softmax(energy, axis=-1)
    out = jnp.einsum('bhij,bhjd->bhid', attn, V)
    out = out.transpose(0, 2, 1, 3).reshape(b, n, hid_dim)
    return out @ wfc + bfc


if __name__ == "__main__":
    # Small, forward-consistent shapes.
    B, N, INP_DIM, HID_DIM, NUM_HEADS = 2, 8, 16, 32, 4

    key0 = jax.random.PRNGKey(0)
    keys = jax.random.split(key0, 9)

    query = jax.random.normal(keys[0], (B, N, INP_DIM), dtype=jnp.float32)
    key_in = jax.random.normal(keys[1], (B, N, INP_DIM), dtype=jnp.float32)
    value = jax.random.normal(keys[2], (B, N, INP_DIM), dtype=jnp.float32)

    # Deterministic synthetic parameters (nn.Linear-equivalent, stored as
    # (in, out)); pos_embed is nn.Parameter of shape (H, N, N) — randomized
    # here to exercise the add path instead of torch.zeros.
    wq = jax.random.normal(keys[3], (INP_DIM, HID_DIM), dtype=jnp.float32) * 0.1
    wk = jax.random.normal(keys[4], (INP_DIM, HID_DIM), dtype=jnp.float32) * 0.1
    wv = jax.random.normal(keys[5], (INP_DIM, HID_DIM), dtype=jnp.float32) * 0.1
    wfc = jax.random.normal(keys[6], (HID_DIM, INP_DIM), dtype=jnp.float32) * 0.1
    bfc = jax.random.normal(keys[7], (1, INP_DIM), dtype=jnp.float32) * 0.1
    pos = jax.random.normal(keys[8], (NUM_HEADS, N, N), dtype=jnp.float32) * 0.1

    out = mhca_ein(query, key_in, value, wq, wk, wv, wfc, bfc, pos,
                   n_heads=NUM_HEADS)
    out = jax.block_until_ready(out)

    ref = mhca_ein_ref(query, key_in, value, wq, wk, wv, wfc, bfc, pos,
                       n_heads=NUM_HEADS)
    np.testing.assert_allclose(np.asarray(out), np.asarray(ref),
                               rtol=1e-4, atol=1e-5)

    print("KERNEL_OK")
</pallas_src>

<mosaic_0001>
module attributes {stable_mosaic.version = 11 : i64} {
  func.func @mhca_kernel(%arg0: i32, %arg1: i32, %arg2: memref<1x8x16xf32, #tpu.memory_space<vmem>>, %arg3: memref<1x8x16xf32, #tpu.memory_space<vmem>>, %arg4: memref<1x8x16xf32, #tpu.memory_space<vmem>>, %arg5: memref<1x16x8xf32, #tpu.memory_space<vmem>>, %arg6: memref<1x16x8xf32, #tpu.memory_space<vmem>>, %arg7: memref<1x16x8xf32, #tpu.memory_space<vmem>>, %arg8: memref<1x8x16xf32, #tpu.memory_space<vmem>>, %arg9: memref<1x16xf32, #tpu.memory_space<vmem>>, %arg10: memref<1x8x8xf32, #tpu.memory_space<vmem>>, %arg11: memref<1x8x16xf32, #tpu.memory_space<vmem>>, %arg12: memref<1x8x16xf32, #tpu.memory_space<vmem>>) attributes {dimension_semantics = [#tpu.dimension_semantics<parallel>, #tpu.dimension_semantics<arbitrary>], iteration_bounds = array<i64: 2, 4>, scalar_prefetch = 0 : i64, scratch_operands = 1 : i64, tpu.core_type = #tpu.core_type<tc>, window_params = [{transform_indices = @transform_0, window_bounds = array<i64: 1, 8, 16>}, {transform_indices = @transform_1, window_bounds = array<i64: 1, 8, 16>}, {transform_indices = @transform_2, window_bounds = array<i64: 1, 8, 16>}, {transform_indices = @transform_3, window_bounds = array<i64: 1, 16, 8>}, {transform_indices = @transform_4, window_bounds = array<i64: 1, 16, 8>}, {transform_indices = @transform_5, window_bounds = array<i64: 1, 16, 8>}, {transform_indices = @transform_6, window_bounds = array<i64: 1, 8, 16>}, {pipeline_mode = #tpu.pipeline_mode<synchronous>, transform_indices = @transform_7, window_bounds = array<i64: 1, 16>}, {transform_indices = @transform_8, window_bounds = array<i64: 1, 8, 8>}, {transform_indices = @transform_9, window_bounds = array<i64: 1, 8, 16>}]} {
    %c0_i32 = arith.constant 0 : i32
    %0 = arith.cmpi eq, %arg1, %c0_i32 : i32
    %1 = arith.extui %0 : i1 to i32
    %c0_i32_0 = arith.constant 0 : i32
    %2 = arith.cmpi ne, %1, %c0_i32_0 : i32
    scf.if %2 {
      %cst_39 = arith.constant 0.000000e+00 : f32
      %50 = vector.broadcast %cst_39 : f32 to vector<1x8x16xf32>
      %c0_40 = arith.constant 0 : index
      %c0_41 = arith.constant 0 : index
      %c0_42 = arith.constant 0 : index
      %51 = vector.load %arg12[%c0_40, %c0_41, %c0_42] : memref<1x8x16xf32, #tpu.memory_space<vmem>>, vector<1x8x16xf32>
      tpu.vector_store %arg12[%c0_40, %c0_41, %c0_42], %50 {strides = array<i32>} : memref<1x8x16xf32, #tpu.memory_space<vmem>>, vector<1x8x16xf32>,
    } else {
    }
    %c0 = arith.constant 0 : index
    %c0_1 = arith.constant 0 : index
    %c0_2 = arith.constant 0 : index
    %3 = vector.load %arg5[%c0, %c0_1, %c0_2] : memref<1x16x8xf32, #tpu.memory_space<vmem>>, vector<1x16x8xf32>
    %4 = vector.shape_cast %3 : vector<1x16x8xf32> to vector<16x8xf32>
    %c0_3 = arith.constant 0 : index
    %c0_4 = arith.constant 0 : index
    %c0_5 = arith.constant 0 : index
    %5 = vector.load %arg6[%c0_3, %c0_4, %c0_5] : memref<1x16x8xf32, #tpu.memory_space<vmem>>, vector<1x16x8xf32>
    %6 = vector.shape_cast %5 : vector<1x16x8xf32> to vector<16x8xf32>
    %c0_6 = arith.constant 0 : index
    %c0_7 = arith.constant 0 : index
    %c0_8 = arith.constant 0 : index
    %7 = vector.load %arg7[%c0_6, %c0_7, %c0_8] : memref<1x16x8xf32, #tpu.memory_space<vmem>>, vector<1x16x8xf32>
    %8 = vector.shape_cast %7 : vector<1x16x8xf32> to vector<16x8xf32>
    %c0_9 = arith.constant 0 : index
    %c0_10 = arith.constant 0 : index
    %c0_11 = arith.constant 0 : index
    %9 = vector.load %arg8[%c0_9, %c0_10, %c0_11] : memref<1x8x16xf32, #tpu.memory_space<vmem>>, vector<1x8x16xf32>
    %10 = vector.shape_cast %9 : vector<1x8x16xf32> to vector<8x16xf32>
    %c0_12 = arith.constant 0 : index
    %c0_13 = arith.constant 0 : index
    %c0_14 = arith.constant 0 : index
    %11 = vector.load %arg10[%c0_12, %c0_13, %c0_14] : memref<1x8x8xf32, #tpu.memory_space<vmem>>, vector<1x8x8xf32>
    %12 = vector.shape_cast %11 : vector<1x8x8xf32> to vector<8x8xf32>
    %c0_15 = arith.constant 0 : index
    %c0_16 = arith.constant 0 : index
    %c0_17 = arith.constant 0 : index
    %13 = vector.load %arg2[%c0_15, %c0_16, %c0_17] : memref<1x8x16xf32, #tpu.memory_space<vmem>>, vector<1x8x16xf32>
    %14 = vector.shape_cast %13 : vector<1x8x16xf32> to vector<8x16xf32>
    %c0_18 = arith.constant 0 : index
    %c0_19 = arith.constant 0 : index
    %c0_20 = arith.constant 0 : index
    %15 = vector.load %arg3[%c0_18, %c0_19, %c0_20] : memref<1x8x16xf32, #tpu.memory_space<vmem>>, vector<1x8x16xf32>
    %16 = vector.shape_cast %15 : vector<1x8x16xf32> to vector<8x16xf32>
    %c0_21 = arith.constant 0 : index
    %c0_22 = arith.constant 0 : index
    %c0_23 = arith.constant 0 : index
    %17 = vector.load %arg4[%c0_21, %c0_22, %c0_23] : memref<1x8x16xf32, #tpu.memory_space<vmem>>, vector<1x8x16xf32>
    %18 = vector.shape_cast %17 : vector<1x8x16xf32> to vector<8x16xf32>
    %cst = arith.constant dense<0.000000e+00> : vector<8x8xf32>
    %19 = tpu.matmul %14, %4, %cst {dimension_numbers = #tpu.dot_dimension_numbers<[1], [0], [0], [1], [0, 0, 1, 1], [], []>} : vector<8x16xf32>, vector<16x8xf32>, vector<8x8xf32> -> vector<8x8xf32>
    %cst_24 = arith.constant 0.353553385 : f32
    %20 = vector.broadcast %cst_24 : f32 to vector<8x8xf32>
    %21 = arith.mulf %19, %20 : vector<8x8xf32>
    %22 = vector.shape_cast %21 : vector<8x8xf32> to vector<1x8x8xf32>
    %cst_25 = arith.constant dense<0.000000e+00> : vector<8x8xf32>
    %23 = tpu.matmul %16, %6, %cst_25 {dimension_numbers = #tpu.dot_dimension_numbers<[1], [0], [0], [1], [0, 0, 1, 1], [], []>} : vector<8x16xf32>, vector<16x8xf32>, vector<8x8xf32> -> vector<8x8xf32>
    %24 = vector.shape_cast %23 : vector<8x8xf32> to vector<1x8x8xf32>
    %cst_26 = arith.constant dense<0.000000e+00> : vector<8x8xf32>
    %25 = tpu.matmul %18, %8, %cst_26 {dimension_numbers = #tpu.dot_dimension_numbers<[1], [0], [0], [1], [0, 0, 1, 1], [], []>} : vector<8x16xf32>, vector<16x8xf32>, vector<8x8xf32> -> vector<8x8xf32>
    %26 = vector.shape_cast %25 : vector<8x8xf32> to vector<1x8x8xf32>
    %cst_27 = arith.constant dense<0.000000e+00> : vector<1x8x8xf32>
    %27 = tpu.matmul %22, %24, %cst_27 {dimension_numbers = #tpu.dot_dimension_numbers<[2], [2], [1], [1], [0, 0, 0, 1, 1, 1], [0], [0]>} : vector<1x8x8xf32>, vector<1x8x8xf32>, vector<1x8x8xf32> -> vector<1x8x8xf32>
    %28 = vector.shape_cast %12 : vector<8x8xf32> to vector<1x8x8xf32>
    %29 = arith.addf %27, %28 : vector<1x8x8xf32>
    %cst_28 = arith.constant dense<0xFF800000> : vector<1x8xf32>
    %30 = vector.multi_reduction <maximumf>, %29, %cst_28 [2] : vector<1x8x8xf32> to vector<1x8xf32>
    %31 = vector.shape_cast %30 : vector<1x8xf32> to vector<1x8x1xf32>
    %32 = vector.broadcast %31 : vector<1x8x1xf32> to vector<1x8x8xf32>
    %33 = arith.subf %29, %32 : vector<1x8x8xf32>
    %34 = math.exp %33 : vector<1x8x8xf32>
    %cst_29 = arith.constant dense<0.000000e+00> : vector<1x8xf32>
    %35 = vector.multi_reduction <add>, %34, %cst_29 [2] : vector<1x8x8xf32> to vector<1x8xf32>
    %36 = vector.shape_cast %35 : vector<1x8xf32> to vector<1x8x1xf32>
    %37 = tpu.reciprocal %36 : vector<1x8x1xf32> -> vector<1x8x1xf32>
    %38 = vector.broadcast %37 : vector<1x8x1xf32> to vector<1x8x8xf32>
    %39 = arith.mulf %34, %38 : vector<1x8x8xf32>
    %cst_30 = arith.constant dense<0.000000e+00> : vector<1x8x8xf32>
    %40 = tpu.matmul %39, %26, %cst_30 {dimension_numbers = #tpu.dot_dimension_numbers<[2], [1], [1], [2], [0, 0, 0, 1, 1, 2], [0], [0]>} : vector<1x8x8xf32>, vector<1x8x8xf32>, vector<1x8x8xf32> -> vector<1x8x8xf32>
    %41 = vector.shape_cast %40 : vector<1x8x8xf32> to vector<8x8xf32>
    %cst_31 = arith.constant dense<0.000000e+00> : vector<8x16xf32>
    %42 = tpu.matmul %41, %10, %cst_31 {dimension_numbers = #tpu.dot_dimension_numbers<[1], [0], [0], [1], [0, 0, 1, 1], [], []>} : vector<8x8xf32>, vector<8x16xf32>, vector<8x16xf32> -> vector<8x16xf32>
    %43 = vector.shape_cast %42 : vector<8x16xf32> to vector<1x8x16xf32>
    %c0_32 = arith.constant 0 : index
    %c0_33 = arith.constant 0 : index
    %c0_34 = arith.constant 0 : index
    %44 = vector.load %arg12[%c0_32, %c0_33, %c0_34] : memref<1x8x16xf32, #tpu.memory_space<vmem>>, vector<1x8x16xf32>
    %45 = arith.addf %44, %43 : vector<1x8x16xf32>
    %c0_35 = arith.constant 0 : index
    %c0_36 = arith.constant 0 : index
    %c0_37 = arith.constant 0 : index
    %46 = vector.load %arg12[%c0_35, %c0_36, %c0_37] : memref<1x8x16xf32, #tpu.memory_space<vmem>>, vector<1x8x16xf32>
    tpu.vector_store %arg12[%c0_35, %c0_36, %c0_37], %45 {strides = array<i32>} : memref<1x8x16xf32, #tpu.memory_space<vmem>>, vector<1x8x16xf32>,
    %c3_i32 = arith.constant 3 : i32
    %47 = arith.cmpi eq, %arg1, %c3_i32 : i32
    %48 = arith.extui %47 : i1 to i32
    %c0_i32_38 = arith.constant 0 : i32
    %49 = arith.cmpi ne, %48, %c0_i32_38 : i32
    scf.if %49 {
      %c0_39 = arith.constant 0 : index
      %c0_40 = arith.constant 0 : index
      %c0_41 = arith.constant 0 : index
      %50 = vector.load %arg12[%c0_39, %c0_40, %c0_41] : memref<1x8x16xf32, #tpu.memory_space<vmem>>, vector<1x8x16xf32>
      %c0_42 = arith.constant 0 : index
      %c0_43 = arith.constant 0 : index
      %51 = vector.load %arg9[%c0_42, %c0_43] : memref<1x16xf32, #tpu.memory_space<vmem>>, vector<1x16xf32>
      %52 = vector.shape_cast %51 : vector<1x16xf32> to vector<1x1x16xf32>
      %53 = vector.broadcast %52 : vector<1x1x16xf32> to vector<1x8x16xf32>
      %54 = arith.addf %50, %53 : vector<1x8x16xf32>
      %c0_44 = arith.constant 0 : index
      %c0_45 = arith.constant 0 : index
      %c0_46 = arith.constant 0 : index
      %55 = vector.load %arg11[%c0_44, %c0_45, %c0_46] : memref<1x8x16xf32, #tpu.memory_space<vmem>>, vector<1x8x16xf32>
      tpu.vector_store %arg11[%c0_44, %c0_45, %c0_46], %54 {strides = array<i32>} : memref<1x8x16xf32, #tpu.memory_space<vmem>>, vector<1x8x16xf32>,
    } else {
    }
    return
  }
  func.func @transform_0(%arg0: i32, %arg1: i32) -> (i32, i32, i32) {
    %c0_i32 = arith.constant 0 : i32
    %c0_i32_0 = arith.constant 0 : i32
    %c0_i32_1 = arith.constant 0 : i32
    return %arg0, %c0_i32, %c0_i32_0 : i32, i32, i32
  }
  func.func @transform_1(%arg0: i32, %arg1: i32) -> (i32, i32, i32) {
    %c0_i32 = arith.constant 0 : i32
    %c0_i32_0 = arith.constant 0 : i32
    %c0_i32_1 = arith.constant 0 : i32
    return %arg0, %c0_i32, %c0_i32_0 : i32, i32, i32
  }
  func.func @transform_2(%arg0: i32, %arg1: i32) -> (i32, i32, i32) {
    %c0_i32 = arith.constant 0 : i32
    %c0_i32_0 = arith.constant 0 : i32
    %c0_i32_1 = arith.constant 0 : i32
    return %arg0, %c0_i32, %c0_i32_0 : i32, i32, i32
  }
  func.func @transform_3(%arg0: i32, %arg1: i32) -> (i32, i32, i32) {
    %c0_i32 = arith.constant 0 : i32
    %c0_i32_0 = arith.constant 0 : i32
    %c0_i32_1 = arith.constant 0 : i32
    return %arg1, %c0_i32, %c0_i32_0 : i32, i32, i32
  }
  func.func @transform_4(%arg0: i32, %arg1: i32) -> (i32, i32, i32) {
    %c0_i32 = arith.constant 0 : i32
    %c0_i32_0 = arith.constant 0 : i32
    %c0_i32_1 = arith.constant 0 : i32
    return %arg1, %c0_i32, %c0_i32_0 : i32, i32, i32
  }
  func.func @transform_5(%arg0: i32, %arg1: i32) -> (i32, i32, i32) {
    %c0_i32 = arith.constant 0 : i32
    %c0_i32_0 = arith.constant 0 : i32
    %c0_i32_1 = arith.constant 0 : i32
    return %arg1, %c0_i32, %c0_i32_0 : i32, i32, i32
  }
  func.func @transform_6(%arg0: i32, %arg1: i32) -> (i32, i32, i32) {
    %c0_i32 = arith.constant 0 : i32
    %c0_i32_0 = arith.constant 0 : i32
    %c0_i32_1 = arith.constant 0 : i32
    return %arg1, %c0_i32, %c0_i32_0 : i32, i32, i32
  }
  func.func @transform_7(%arg0: i32, %arg1: i32) -> (i32, i32) {
    %c0_i32 = arith.constant 0 : i32
    %c0_i32_0 = arith.constant 0 : i32
    %c0_i32_1 = arith.constant 0 : i32
    return %c0_i32, %c0_i32_0 : i32, i32
  }
  func.func @transform_8(%arg0: i32, %arg1: i32) -> (i32, i32, i32) {
    %c0_i32 = arith.constant 0 : i32
    %c0_i32_0 = arith.constant 0 : i32
    %c0_i32_1 = arith.constant 0 : i32
    return %arg1, %c0_i32, %c0_i32_0 : i32, i32, i32
  }
  func.func @transform_9(%arg0: i32, %arg1: i32) -> (i32, i32, i32) {
    %c0_i32 = arith.constant 0 : i32
    %c0_i32_0 = arith.constant 0 : i32
    %c0_i32_1 = arith.constant 0 : i32
    return %arg0, %c0_i32, %c0_i32_0 : i32, i32, i32
  }
}

</mosaic_0001>

<bundles_post_ra>
// kernel: tpu_custom_call.1
= control target key start
LH: loop header
LB: loop body
LE: loop exit
PB: predicated region body
PF: predicated region fallthrough
CT: control target
= control target key end

     0   :  { %s1656_s0 = inlined_call_operand.vmem [shape: f32[2,8,16], index: 0, kind: input, shape index: {}]   ;;  %s1657_s1 = inlined_call_operand.vmem [shape: f32[2,8,16], index: 1, kind: input, shape index: {}]   ;;  %s1658_s2 = inlined_call_operand.vmem [shape: f32[2,8,16], index: 2, kind: input, shape index: {}]   ;;  %s1659_s3 = inlined_call_operand.vmem [shape: f32[4,16,8], index: 3, kind: input, shape index: {}]   ;;  %s1660_s4 = inlined_call_operand.vmem [shape: f32[4,16,8], index: 4, kind: input, shape index: {}]   ;;  %s1661_s5 = inlined_call_operand.vmem [shape: f32[4,16,8], index: 5, kind: input, shape index: {}]   ;;  %s1662_s6 = inlined_call_operand.vmem [shape: f32[4,8,16], index: 6, kind: input, shape index: {}]   ;;  %s1663_s7 = inlined_call_operand.vmem [shape: f32[1,16], index: 7, kind: input, shape index: {}]   ;;  %s1664_s8 = inlined_call_operand.vmem [shape: f32[4,8,8], index: 8, kind: input, shape index: {}]   ;;  %s1665_s9 = inlined_call_operand.hbm [shape: f32[2,8,16], index: 9, kind: output, shape index: {}]  }
   0x1   :  { %1678 = sst [smem:[#allocation16_spill]] %s1657_s1 }
   0x2   :  { %1679 = sst [smem:[#allocation17_spill]] %s1665_s9 }
   0x3   :  { %14 = vsyncpa [#allocation4], 0 }
   0x4   :  { %16 = vsyncpa [#allocation4 + $0x1], 0  ;;  %s1449_s30 = smov 0   ;;  %s1451_s10 = smov 0  }
   0x5   :  { %s1453_s11 = smov 0   ;;  %s1455_s12 = smov 0  }
   0x6   :  { %s1457_s13 = smov 0   ;;  %s1459_s14 = smov 0  }
   0x7   :  { %s1461_s15 = smov 0   ;;  %s1463_s16 = smov 0  }
   0x8 LB: > { %1680 = sst [smem:[#allocation6_spill]] %s1364_s30  ;;  %s1125_s17 = sadd.s32 4294967295, %s1392_s16   ;;  %s1392_s16 = sphi %s1463_s16, %s22_s16   ;;  %s1388_s15 = sphi %s1461_s15, %s1707_s15   ;;  %s1384_s14 = sphi %s1459_s14, %s1706_s14   ;;  %s1380_s13 = sphi %s1457_s13, %s1705_s13   ;;  %s1376_s12 = sphi %s1455_s12, %s1710_s12   ;;  %s1372_s11 = sphi %s1453_s11, %s1703_s11   ;;  %s1368_s10 = sphi %s1451_s10, %s1709_s10   ;;  %s1364_s30 = sphi %s1449_s30, %s1708_s30  }
   0x9   : > { %1681 = sst [smem:[#allocation7_spill]] %s1372_s11  ;;  %s1126_s18 = sadd.s32 4294967294, %s1392_s16  }
   0xa   : > { %1682 = sst [smem:[#allocation8_spill]] %s1384_s14  ;;  %s31_s19 = sadd.s32 1, %s1384_s14 }
   0xb   : > { %1683 = sst [smem:[#allocation9_spill]] %s1388_s15  ;;  %p32_p0 = scmp.ge.s32.totalorder %s31_s19, 4 }
   0xc   : > { %1684 = sst [smem:[#allocation10_spill]] %s1392_s16  ;;  %s34_s20 = sadd.s32 1, %s1388_s15 }
   0xd   : > { %p280_p1 = scmp.ne.s32.totalorder %s1372_s11, %s1368_s10  ;;  %p281_p2 = scmp.eq.s32.totalorder %s1125_s17, 7 }
   0xe   : > { %s1712_s19 = smov (%p32_p0, %s31_s19), 0  ;;  %s1714_s20 = smov (!%p32_p0, %s34_s20), %s1388_s15 }
   0xf   : > { %1685 = sst [smem:[#allocation11_spill]] %s1712_s19  ;;  %p1498_p3 = por %p281_p2, %p280_p1 }
  0x10   : > { %p286_p4 = scmp.ne.s32.totalorder %s1368_s10, %s1364_s30  ;;  %p36_p5 = scmp.ge.s32.totalorder %s1714_s20, 2 }
  0x11   : > { %s1686_s21 = scalar_select %p1498_p3, 1, 0 }
  0x12   : > { %p287_p6 = scmp.eq.s32.totalorder %s1126_s18, 7  ;;  %p1129_p7 = scmp.ge.s32.totalorder %s1392_s16, 1 }
  0x13   : > { %1687 = sst [smem:[#allocation12_spill]] %s1686_s21  ;;  %p367_p8 = scmp.lt.s32.totalorder %s1392_s16, 9 }
  0x14   : > { %s1716_s20 = smov (%p36_p5, %s1714_s20), 0  ;;  %p1508_p9 = por %p287_p6, %p286_p4 }
  0x15   : > { %1688 = sst [smem:[#allocation13_spill]] %s1716_s20  ;;  %p368_p10 = pnand %p1129_p7, %p367_p8 }
  0x16   : > { %s1689_s22 = scalar_select %p1508_p9, 1, 0 }
  0x17   : > { %s267_s23 = ssub.s32 %s1388_s15, %s1716_s20  ;;  %s270_s24 = sadd.s32 1, %s1372_s11 }
  0x18   : > { %1690 = sst [smem:[#allocation14_spill]] %s1689_s22  ;;  %p268_p11 = scmp.eq.s32.totalorder %s267_s23, 0 }
  0x19   : > { %371 = sbr.rel (%p368_p10) target bundleno = 1254 (0x4e6), region = 56  ;;  %s1669_s26 = sand.u32 (!%p368_p10), 1, %s1368_s10  }
  0x1a   : > { %s1516_s25 = scalar_select %p268_p11, %s1372_s11, %s270_s24  }
  0x1b   : > { %p433_p12 = scmp.lt.s32.totalorder (!%p368_p10), %s1380_s13, 1  ;;  %s1522_s27 = sshll.u32 (!%p368_p10), %s1669_s26, 3 }
  0x1c   : > { %1691 = sst [smem:[#allocation15_spill]] %s1516_s25  ;;  %p445_p13 = scmp.lt.s32.totalorder (!%p368_p10), %s1376_s12, 3 }
  0x1d   : > { %s1692_s1 = sld [smem:[#allocation16_spill]] (!%p368_p10)  ;;  %s432_s22 = scalar_lea.vmem (!%p368_p10), [#allocation3], %s1522_s27 }
  0x1e   : > { %p1142_p0 = scmp.ne.s32.totalorder (!%p368_p10), %s1376_s12, 0 }
  0x20   : > { %s434_s28 = scalar_select %p433_p12, %s1380_s13, 1 }
  0x21   : > { %s446_s29 = scalar_select %p445_p13, %s1376_s12, 3 }
  0x22   : > { %s1527_s17 = sshll.u32 %s434_s28, 3  ;;  %471 = sbr.rel (%p1142_p0) target bundleno = 41 (0x29), region = 60  ;;  %vm472_vm0 = vcmask (!%p1142_p0), 130048   ;;  %v1394_v0 = vmov (!%p1142_p0), 0.0  }
  0x23   : > { %s440_s15 = scalar_lea.vmem %s1692_s1, %s1527_s17  ;;  %s1156_s11 = sshll.u32 %s446_s29, 4  ;;  %473 = vst.msk [vmem:[#allocation2] sm:$0xff] (!%p1142_p0), %vm472_vm0, %v1394_v0 }
  0x24   : > { %s449_s28 = scalar_lea.vmem %s1659_s3, %s1156_s11  ;;  %s454_s18 = scalar_lea.vmem %s1660_s4, %s1156_s11 }
  0x25   : > { %s1550_s24 = scalar_lea.vmem %s1661_s5, %s1156_s11  ;;  %s1140_s19 = sshll.u32 %s446_s29, 3 }
  0x26   : > { %s1555_s14 = scalar_lea.vmem %s1662_s6, %s1140_s19  ;;  %s1560_s30 = scalar_lea.vmem %s1664_s8, %s1140_s19 }
  0x29 PF: > { %v476_v1 = vld [vmem:[%s454_s18] sm:$0xff]  ;;  %v477_v2 = vld [vmem:[%s454_s18 + $0x8] sm:$0xff]  ;;  %v1395_v4 = vmov 0.0|0.0   ;;  %vm1396_vm1 = vmmov 0   ;;  %v1397_v8 = vmov 0.0   ;;  %vm485_vm2 = vcmask 130048   ;;  %s1693_s11 = scalar_lea.vmem %s1656_s0, %s1527_s17  ;;  %s1694_s21 = scalar_lea.vmem %s1658_s2, %s1527_s17 }
  0x2a   : > { %v474_v3 = vld [vmem:[%s449_s28] sm:$0xff]  ;;  %1213 = vmatprep.subr.bf16.mxu1 %v1395_v4  ;;  %1210 = vmatprep.subr.bf16.mxu0 %v1395_v4  ;;  %v1214_v5 = vpack.c.bf16 %v477_v2, %v476_v1  ;;  %v475_v6 = vld [vmem:[%s449_s28 + $0x8] sm:$0xff]  ;;  %vm706_vm3 = vcmask 64512   ;;  %p1150_p1 = scmp.ne.s32.totalorder %s1376_s12, 3 }
  0x2b   : > { %v1211_v7 = vpack.c.bf16 %v475_v6, %v474_v3  ;;  %1185 = vmatprep.mubr.msk.f32.mxu1 %vm1396_vm1, %v1397_v8  ;;  %1178 = vmatprep.mubr.msk.f32.mxu0 %vm1396_vm1, %v1397_v8  ;;  %v483_v9 = vld [vmem:[%s440_s15] sm:$0xff]  ;;  %v479_v17 = vld [vmem:[%s1550_s24 + $0x8] sm:$0xff] }
  0x2c   : > { %1215 = vmatpush3.bf16.msra.mxu1 %v1214_v5  ;;  %v482_v10 = vld [vmem:[%s1693_s11] sm:$0xff] }
  0x2d   : > { %1212 = vmatpush3.bf16.msra.mxu0 %v1211_v7  ;;  %1195 = vmatprep.subr.mxu1 %v1397_v8  ;;  %v478_v16 = vld [vmem:[%s1550_s24] sm:$0xff] }
  0x2e   : > { %1216 = vmatprep.subr.bf16.mxu0 %v1395_v4  ;;  %v1217_v18 = vpack.c.bf16 %v479_v17, %v478_v16  ;;  %v484_v19 = vld [vmem:[%s1694_s21] sm:$0xff] }
  0x2f   : > { %1186 = vmatmul.mubr.msk.f32.vlgmr.msra.gmra.mrb[0].mxu1 %vm485_vm2, %v483_v9  ;;  %v481_v20 = vld [vmem:[%s1560_s30] sm:$0xff] }
  0x30   : > { %1179 = vmatmul.mubr.msk.f32.vlgmr.msra.gmra.mrb[0].mxu0 %vm485_vm2, %v482_v10  ;;  %1197 = vmatprep.mubr.msk.f32.mxu1 %vm1396_vm1, %v1397_v8  ;;  %v480_v32 = vld [vmem:[%s1555_s14] sm:$0xff] }
  0x31   : > { %1192 = vmatprep.mubr.msk.f32.mxu0 %vm1396_vm1, %v1397_v8  ;;  %1218 = vmatpush3.bf16.msra.mxu0 %v1217_v18  ;;  %v940_v38 = vld [vmem:[#allocation2] sm:$0xff] }
  0x32   : > { %1200 = vmatprep.subr.mxu0 %v1397_v8  ;;  %v1151_v43 = vld [vmem:[%s1663_s7] ss:$0 sm:$0xff] (!%p1150_p1) }
  0x34   : > { %1193 = vmatmul.mubr.msk.f32.vlgmr.msra.gmra.mrb[2].mxu0 %vm485_vm2, %v484_v19 }
  0x35   : > { %1202 = vmatprep.mubr.msk.f32.mxu0 %vm1396_vm1, %v1397_v8 }
 0x102   : > { %v629_v11 = vpop.f32.mrb[0].mxu1 }
 0x103   : > { %v555_v12 = vpop.f32.mrb[0].mxu0  ;;  %v1187_v13 = vpop.f32.mrb[1].mxu1  ;;  %1196 = vmatpush3.xpose.msk.msra.mxu1 %vm706_vm3, %v629_v11 }
 0x104   : > { %v559_v14 = vmul.f32 0.35355338, %v555_v12  ;;  %v1180_v15 = vpop.f32.mrb[1].mxu0  ;;  %1205 = vmatprep.subr.mxu1 %v1397_v8 }
 0x106   : > { %1198 = vmatmul.mubr.msk.f32.vlgmr.msra.gmra.mrb[2].mxu1 %vm706_vm3, %v559_v14 }
 0x107   : > { %1207 = vmatprep.mubr.msk.f32.mxu1 %vm1396_vm1, %v1397_v8  ;;  %v702_v30 = vpop.f32.mrb[2].mxu0  ;;  %1206 = vmatpush3.msra.mxu1 %v480_v32 }
 0x108   : > { %v1194_v31 = vpop.f32.mrb[3].mxu0  ;;  %1201 = vmatpush3.msra.mxu0 %v702_v30 }
 0x1d9   : > { %v779_v21 = vpop.f32.mrb[2].mxu1 }
 0x1da   : > { %v780_v22 = vadd.f32 %v779_v21, %v481_v20  ;;  %v1199_v23 = vpop.f32.mrb[3].mxu1 }
 0x1dc   : > { %v783_v24 = vsel %vm706_vm3, %v780_v22, -inf }
 0x1dd   : > { %784 = vmax.xlane.f32.xlu0 %v783_v24 }
 0x26a   : > { %v785_v25 = vpop.xlane.xlu0 %784 }
 0x26b   : > { %v786_v26 = vsub.f32 %v780_v22, %v785_v25 }
 0x26d   : > { %v787_v27 = vmul.f32 1.442695, %v786_v26 }
 0x26f   : > { %1294 = vpow2.f32 %v787_v27 }
 0x279   : > { %v1295_v28 = vpop.eup %1294 }
 0x27a   : > { %v789_v29 = vsel %vm706_vm3, %v1295_v28, 0.0 }
 0x27b   : > { %790 = vadd.xlane.f32.xlu0 %v789_v29 }
 0x308   : > { %v791_v33 = vpop.xlane.xlu0 %790 }
 0x309   : > { %1296 = vrcp.f32 %v791_v33 }
 0x313   : > { %v1297_v34 = vpop.eup %1296 }
 0x314   : > { %v793_v35 = vmul.f32 %v1297_v34, %v1295_v28 }
 0x316   : > { %1203 = vmatmul.mubr.msk.f32.vlgmr.msra.gmra.mrb[4].mxu0 %vm706_vm3, %v793_v35 }
 0x3e9   : > { %v863_v36 = vpop.f32.mrb[4].mxu0 }
 0x3ea   : > { %v1204_v37 = vpop.f32.mrb[5].mxu0  ;;  %1208 = vmatmul.mubr.msk.f32.vlgmr.msra.gmra.mrb[4].mxu1 %vm706_vm3, %v863_v36 }
 0x4ba   : > { %946 = sbr.rel (%p1150_p1) target bundleno = 1227 (0x4cb), region = 64 }
 0x4bd   : > { %v936_v39 = vpop.f32.mrb[4].mxu1 }
 0x4be   : > { %v941_v40 = vadd.f32 %v940_v38, %v936_v39  ;;  %v1209_v41 = vpop.f32.mrb[5].mxu1 }
 0x4c0   : > { %942 = vst.msk [vmem:[#allocation2] sm:$0xff] %vm485_vm2, %v941_v40 }
 0x4c7   : > { %v947_v42 = vld [vmem:[#allocation2] sm:$0xff] }
 0x4c8   : > { %v955_v44 = vadd.f32 %v1151_v43, %v947_v42 }
 0x4ca   : > { %956 = vst.msk [vmem:[%s432_s22] sm:$0xff] %vm485_vm2, %v955_v44 }
 0x4cb PF: > { %s1153_s24 = sshll.u32 %s1380_s13, 7  ;;  %s1696_s12 = sld [smem:[#allocation17_spill]] }
 0x4cc   : > { %s971_s20 = sshll.u32 %s432_s22, 4  ;;  %s1698_s14 = sand.u32 1, %s1368_s10   ;;  %s972_s20 = int_to_ptr.vmem [resolvable:$true] %s971_s20 }
 0x4cd   : > { %s958_s26 = scalar_lea.sflag [#allocation4], %s1698_s14  ;;  %s1298_s30 = scalar_lea.vmem %s972_s20, 128 }
 0x4ce   : > { %p1299_p2 = scmp.ne.s32.totalorder %s972_s20, %s1298_s30  ;;  %s1398_s1 = smov [#allocation3]  }
 0x4cf   : > { %s1302_s9 = sshll.u32 %s1398_s1, 4  ;;  %s1303_s9 = int_to_ptr.vmem [resolvable:$false] %s1302_s9 }
 0x4d0   : > { %p1300_p4 = pnand %p1299_p2, %p1498_p3  ;;  %s1304_s11 = scalar_lea.vmem %s1303_s9, 256 }
 0x4d1   : > { %s1697_s23 = smov %s1696_s12  ;;  %s1605_s19 = scalar_lea.hbm %s1696_s12, %s1153_s24 }
 0x4d2   : > { %p1301_p5 = pneg %p1300_p4  ;;  %p1305_p6 = scmp.lt.s32.totalorder %s972_s20, %s1303_s9 }
 0x4d3   : > { %p1306_p7 = scmp.lt.s32.totalorder %s1304_s11, %s1298_s30 }
 0x4d5   : > { %p1307_p8 = por %p1306_p7, %p1305_p6 }
 0x4d7   : > { %p1308_p10 = pnand %p1307_p8, %p1301_p5 }
 0x4d9   : > { %1311 = shalt.err (!%p1308_p10)
}
 0x4da   : > { %s1312_s13 = scalar_lea.hbm %s1605_s19, 128  ;;  %s1316_s15 = scalar_lea.hbm %s1697_s23, 256 }
 0x4db   : > { %p1313_p11 = scmp.ne.s32.totalorder %s1605_s19, %s1312_s13  ;;  %p1317_p0 = scmp.lt.u32.totalorder %s1605_s19, %s1697_s23 }
 0x4dc   : > { %p1318_p1 = scmp.lt.u32.totalorder %s1316_s15, %s1312_s13  ;;  %p1320_p4 = scmp.lt.u32.totalorder %s1312_s13, %s1605_s19 }
 0x4dd   : > { %p1314_p12 = pnand %p1313_p11, %p1498_p3 }
 0x4de   : > { %p1319_p2 = por %p1318_p1, %p1317_p0 }
 0x4df   : > { %p1315_p13 = pneg %p1314_p12 }
 0x4e0   : > { %p1321_p5 = por %p1320_p4, %p1319_p2 }
 0x4e2   : > { %p1322_p6 = pnand %p1321_p5, %p1315_p13 }
 0x4e4   : > { %1325 = shalt.err (!%p1322_p6)
}
 0x4e5   : > { %1219 = dma.vmem_to_hbm [thread:$0]  (%p1498_p3), %s972_s20, 128, %s1605_s19, %s958_s26  }
 0x4e6 PF: > { %s1699_s25 = sld [smem:[#allocation10_spill]]  ;;  %s1700_s29 = sld [smem:[#allocation6_spill]] }
 0x4ec   : > { %p1225_p7 = scmp.ge.s32.totalorder %s1699_s25, 2  ;;  %s983_s28 = sand.u32 1, %s1700_s29  }
 0x4ed   : > { %s984_s18 = scalar_lea.sflag [#allocation4], %s983_s28 }
 0x4ee   : > { %p1222_p8 = pnand %p1225_p7, %p1508_p9 }
 0x4f0   : > { %1359 = dma.done.wait (!%p1222_p8), %s984_s18, 128  }
 0x4f1   : > { %1361 = vsyncadd (!%p1222_p8), %s984_s18, 4294967168  ;;  %s22_s16 = sadd.s32 1, %s1699_s25   ;;  %s1702_s12 = sld [smem:[#allocation7_spill]] }
 0x4f2   : > { %p19_p10 = scmp.ge.s32.totalorder %s22_s16, 10   ;;  %s1703_s11 = sld [smem:[#allocation15_spill]] }
 0x4f3   : > { %s1704_s17 = sld [smem:[#allocation8_spill]]  ;;  %s1705_s13 = sld [smem:[#allocation9_spill]] }
 0x4f4   : > { %s1706_s14 = sld [smem:[#allocation11_spill]]  ;;  %s1707_s15 = sld [smem:[#allocation13_spill]] }
 0x4f5   : > { %s1708_s30 = smov %s1368_s10  ;;  %21 = sbr.rel (!%p19_p10) target bundleno = 8 (0x8), region = 120 }
 0x4f7   : > { %s1709_s10 = smov %s1702_s12 }
 0x4f9   : > { %s1710_s12 = smov %s1704_s17 }
 0x4fc   :  { %989 = vsyncpa [#allocation4], 1 }
 0x4fd   :  { %991 = vsyncpa [#allocation4 + $0x1], 1 }

</bundles_post_ra>
